<compile_context>
chip_gen: v5e
topology: v5e:2x2
jax: 0.10.0
libtpu: 0.0.40
codegen_flags: <defaults>
</compile_context>

<pallas_src>
import functools

import jax
import jax.numpy as jnp
from jax.experimental import pallas as pl
from jax.experimental.pallas import tpu as pltpu

LEAKY_SLOPE = 0.2  # leaky_relu_negative_slope default of the module


def gat_project_kernel(h_ref, w_ref, g_ref):
    # g_lr = h @ [w_l | w_r] : one wide matmul keeps the MXU columns busy.
    g_ref[...] = jnp.dot(h_ref[...], w_ref[...],
                         preferred_element_type=jnp.float32).astype(g_ref.dtype)


def gat_attn_kernel(glT_ref, gr_all_ref, gr_tile_ref, attn_ref, adj_ref, out_ref, *,
                    n_heads, n_hidden, slope):
    tile_i, n_nodes = adj_ref.shape

    # Shared edge mask: computed once, reused by every head.
    mask = adj_ref[...] != 0                          # [TILE_I, N] bool
    neg = jnp.float32(-1e30)                          # finite sentinel (no inf-inf NaN)

    gr_tile = gr_tile_ref[...]                        # [TILE_I, H*Fh] query-row g_r

    head_out = []
    for hd in range(n_heads):                         # unrolled: MXU pushes pipeline back-to-back
        lo = hd * n_hidden

        # e[i, j] = sum_f attn_w[f] * leaky(g_l[j, f] + g_r[i, f])
        # accumulated lane-dense over features: only an [TILE_I, N] f32 accumulator,
        # never an [TILE_I, N, Fh] intermediate (last dim Fh would waste ~94% of lanes).
        e = jnp.zeros((tile_i, n_nodes), jnp.float32)
        for f in range(n_hidden):
            c = lo + f
            gl_row = glT_ref[c:c + 1, :]              # [1, N]      (node j on lanes)
            gr_col = gr_tile[:, c:c + 1]              # [TILE_I, 1]
            s = gl_row + gr_col                       # [TILE_I, N]
            act = jnp.maximum(s, slope * s)           # LeakyReLU (slope < 1)
            e = e + attn_ref[0:1, f:f + 1] * act

        # masked softmax over j (dim=1 of the torch code). Masked entries get the
        # finite -1e30 sentinel: with >=1 edge they underflow to exactly 0 after exp;
        # a fully isolated row degrades to a uniform distribution instead of NaN.
        e = jnp.where(mask, e, neg)
        e_max = jnp.max(e, axis=1, keepdims=True)     # [TILE_I, 1]
        p = jnp.exp(e - e_max)                        # [TILE_I, N]
        denom = jnp.sum(p, axis=1, keepdims=True)     # [TILE_I, 1]
        inv = pl.reciprocal(denom, approx=True)       # EUP slot (otherwise idle)
        inv = inv * (2.0 - denom * inv)               # one Newton step -> ~f32 exact
        # TODO(synk): nn.Dropout(0.6) on the attention weights is identity here (eval mode).

        # attn_res[i, f] = sum_j a[i, j] * g_r[j, f]; the 1/denom normalization is
        # applied to the narrow [TILE_I, Fh] result, not the wide [TILE_I, N] matrix.
        # (For extra MXU throughput on v6e/v7x, p and gr_h could be cast to bfloat16
        #  here; kept f32 for exact parity with the f32 reference.)
        gr_h = gr_all_ref[:, lo:lo + n_hidden]        # [N, Fh]
        res = jnp.dot(p, gr_h, preferred_element_type=jnp.float32)   # [TILE_I, Fh]
        head_out.append(res * inv)

    # single lane-dense store of the concatenated heads (is_concat=True path)
    out_ref[...] = jnp.concatenate(head_out, axis=1).astype(out_ref.dtype)


def _round_up(x, m):
    return ((x + m - 1) // m) * m


def _pick_tile(n, target):
    # Full array as a single block when small (always layout-legal); otherwise a
    # multiple of 32 so the int8 adjacency sublane tiling stays aligned.
    if n <= target:
        return n
    return _round_up(target, 32)


def gat_forward(h, w_l, w_r, attn_w, adj_mat, *, n_heads, n_hidden,
                tile_i=256, tile_m=256):
    n_nodes, in_features = h.shape
    hf = n_heads * n_hidden

    # Single [N, N] int8 mask shared by every head (the module documents a shared
    # [N, N, 1] adjacency) -- 1 byte/edge of HBM/VMEM instead of n_heads*4.
    # TODO(synk): distinct per-head adjacency ([N, N, n_heads] with different masks) not supported.
    adj2d = adj_mat[:, :, 0] if adj_mat.ndim == 3 else adj_mat
    adj_i8 = (adj2d != 0).astype(jnp.int8)

    # Fused projection weights: one wide MXU matmul instead of two narrow ones.
    w_lr = jnp.concatenate([w_l, w_r], axis=1)        # [Fin, 2*H*Fh]

    # ---- stage 1: g_lr = h @ [w_l | w_r], row-tiled ------------------------------
    tm = _pick_tile(n_nodes, tile_m)
    g_lr = pl.pallas_call(
        gat_project_kernel,
        out_shape=jax.ShapeDtypeStruct((n_nodes, 2 * hf), jnp.float32),
        grid_spec=pltpu.PrefetchScalarGridSpec(
            num_scalar_prefetch=0,
            grid=(pl.cdiv(n_nodes, tm),),
            in_specs=[pl.BlockSpec((tm, in_features), lambda i: (i, 0)),
                      pl.BlockSpec((in_features, 2 * hf), lambda i: (0, 0))],
            out_specs=pl.BlockSpec((tm, 2 * hf), lambda i: (i, 0))),
        compiler_params=pltpu.CompilerParams(
            dimension_semantics=("parallel",)),
    )(h, w_lr)

    g_l = g_lr[:, :hf]
    g_r = g_lr[:, hf:]
    # Layout plumbing: put node index j on lanes for the lane-dense score broadcast.
    g_l_T = jnp.transpose(g_l)                        # [H*Fh, N]

    # ---- stage 2: attention + aggregation, tiled over query rows -----------------
    ti = _pick_tile(n_nodes, tile_i)
    kernel = functools.partial(gat_attn_kernel, n_heads=n_heads,
                               n_hidden=n_hidden, slope=LEAKY_SLOPE)
    # TODO(synk): is_concat=False (mean over heads) path not implemented; module default is concat.
    out = pl.pallas_call(
        kernel,
        out_shape=jax.ShapeDtypeStruct((n_nodes, hf), jnp.float32),
        grid_spec=pltpu.PrefetchScalarGridSpec(
            num_scalar_prefetch=0,
            grid=(pl.cdiv(n_nodes, ti),),
            in_specs=[
                pl.BlockSpec((hf, n_nodes), lambda i: (0, 0)),   # g_l^T  (resident in VMEM)
                pl.BlockSpec((n_nodes, hf), lambda i: (0, 0)),   # g_r, all nodes (resident)
                pl.BlockSpec((ti, hf), lambda i: (i, 0)),        # g_r rows of this tile
                pl.BlockSpec((1, n_hidden), lambda i: (0, 0)),   # attention vector
                pl.BlockSpec((ti, n_nodes), lambda i: (i, 0)),   # adjacency slab (int8)
            ],
            out_specs=pl.BlockSpec((ti, hf), lambda i: (i, 0))),
        compiler_params=pltpu.CompilerParams(
            dimension_semantics=("parallel",),
            vmem_limit_bytes=48 * 1024 * 1024),       # fits v7x's 64 MiB physical VMEM
    )(g_l_T, g_r, g_r, attn_w, adj_i8)
    return out


def gat_reference(h, w_l, w_r, attn_w, adj_mat, *, n_heads, n_hidden):
    """Pure-JAX reference mirroring the PyTorch forward (eval mode)."""
    n = h.shape[0]
    hp = jax.lax.Precision.HIGHEST
    g_l = jnp.dot(h, w_l, precision=hp).reshape(n, n_heads, n_hidden)
    g_r = jnp.dot(h, w_r, precision=hp).reshape(n, n_heads, n_hidden)
    g_sum = g_l[None, :, :, :] + g_r[:, None, :, :]          # [N, N, H, Fh]
    act = jnp.where(g_sum >= 0, g_sum, LEAKY_SLOPE * g_sum)
    e = jnp.einsum('ijhf,f->ijh', act, attn_w[0], precision=hp)
    adj_b = jnp.broadcast_to(adj_mat, (n, n, n_heads))
    e = jnp.where(adj_b != 0, e, -jnp.inf)
    a = jax.nn.softmax(e, axis=1)
    res = jnp.einsum('ijh,jhf->ihf', a, g_r, precision=hp)
    return res.reshape(n, n_heads * n_hidden)


if __name__ == "__main__":
    # small, module-consistent shapes (tile_i=32 so the row grid has >1 step)
    n_nodes = 64
    in_features = 16
    out_features = 32
    n_heads = 4
    n_hidden = out_features // n_heads   # is_concat=True

    key = jax.random.PRNGKey(0)
    k_h, k_wl, k_wr, k_a, k_adj = jax.random.split(key, 5)

    h = jax.random.normal(k_h, (n_nodes, in_features), jnp.float32)
    # deterministic synthetic weights (transposed vs. torch Linear.weight)
    w_l = 0.1 * jax.random.normal(k_wl, (in_features, n_heads * n_hidden), jnp.float32)
    w_r = 0.1 * jax.random.normal(k_wr, (in_features, n_heads * n_hidden), jnp.float32)
    attn_w = 0.1 * jax.random.normal(k_a, (1, n_hidden), jnp.float32)

    # adjacency [N, N, 1]: random edges plus self-loops (reference stays NaN-free)
    adj = (jax.random.uniform(k_adj, (n_nodes, n_nodes, 1)) > 0.7).astype(jnp.float32)
    adj = jnp.maximum(adj, jnp.eye(n_nodes, dtype=jnp.float32)[:, :, None])

    out = gat_forward(h, w_l, w_r, attn_w, adj,
                      n_heads=n_heads, n_hidden=n_hidden, tile_i=32, tile_m=32)
    out = jax.block_until_ready(out)

    ref = gat_reference(h, w_l, w_r, attn_w, adj, n_heads=n_heads, n_hidden=n_hidden)
    assert out.shape == (n_nodes, out_features)
    max_diff = jnp.max(jnp.abs(out - ref))
    assert jnp.allclose(out, ref, atol=5e-4, rtol=5e-4), (
        f"mismatch vs. JAX reference, max|diff|={max_diff}")

    print("KERNEL_OK")
</pallas_src>

<mosaic_0001>
module attributes {stable_mosaic.version = 11 : i64} {
  func.func @gat_project_kernel(%arg0: i32, %arg1: memref<32x16xf32, #tpu.memory_space<vmem>>, %arg2: memref<16x64xf32, #tpu.memory_space<vmem>>, %arg3: memref<32x64xf32, #tpu.memory_space<vmem>>) attributes {dimension_semantics = [#tpu.dimension_semantics<parallel>], iteration_bounds = array<i64: 2>, scalar_prefetch = 0 : i64, scratch_operands = 0 : i64, tpu.core_type = #tpu.core_type<tc>, window_params = [{transform_indices = @transform_0, window_bounds = array<i64: 32, 16>}, {pipeline_mode = #tpu.pipeline_mode<synchronous>, transform_indices = @transform_1, window_bounds = array<i64: 16, 64>}, {transform_indices = @transform_2, window_bounds = array<i64: 32, 64>}]} {
    %c0 = arith.constant 0 : index
    %c0_0 = arith.constant 0 : index
    %0 = vector.load %arg1[%c0, %c0_0] : memref<32x16xf32, #tpu.memory_space<vmem>>, vector<32x16xf32>
    %c0_1 = arith.constant 0 : index
    %c0_2 = arith.constant 0 : index
    %1 = vector.load %arg2[%c0_1, %c0_2] : memref<16x64xf32, #tpu.memory_space<vmem>>, vector<16x64xf32>
    %cst = arith.constant dense<0.000000e+00> : vector<32x64xf32>
    %2 = tpu.matmul %0, %1, %cst {dimension_numbers = #tpu.dot_dimension_numbers<[1], [0], [0], [1], [0, 0, 1, 1], [], []>} : vector<32x16xf32>, vector<16x64xf32>, vector<32x64xf32> -> vector<32x64xf32>
    %c0_3 = arith.constant 0 : index
    %c0_4 = arith.constant 0 : index
    %3 = vector.load %arg3[%c0_3, %c0_4] : memref<32x64xf32, #tpu.memory_space<vmem>>, vector<32x64xf32>
    tpu.vector_store %arg3[%c0_3, %c0_4], %2 {strides = array<i32>} : memref<32x64xf32, #tpu.memory_space<vmem>>, vector<32x64xf32>,
    return
  }
  func.func @transform_0(%arg0: i32) -> (i32, i32) {
    %c0_i32 = arith.constant 0 : i32
    %c0_i32_0 = arith.constant 0 : i32
    return %arg0, %c0_i32 : i32, i32
  }
  func.func @transform_1(%arg0: i32) -> (i32, i32) {
    %c0_i32 = arith.constant 0 : i32
    %c0_i32_0 = arith.constant 0 : i32
    %c0_i32_1 = arith.constant 0 : i32
    return %c0_i32, %c0_i32_0 : i32, i32
  }
  func.func @transform_2(%arg0: i32) -> (i32, i32) {
    %c0_i32 = arith.constant 0 : i32
    %c0_i32_0 = arith.constant 0 : i32
    return %arg0, %c0_i32 : i32, i32
  }
}

</mosaic_0001>

<bundles_post_ra>
// kernel: tpu_custom_call.1
= control target key start
LH: loop header
LB: loop body
LE: loop exit
PB: predicated region body
PF: predicated region fallthrough
CT: control target
= control target key end

     0   :  { %7 = vsyncpa [#allocation3], 0  ;;  %s511_s0 = inlined_call_operand.vmem [shape: f32[64,16], index: 0, kind: input, shape index: {}]   ;;  %s512_s1 = inlined_call_operand.vmem [shape: f32[16,64], index: 1, kind: input, shape index: {}]   ;;  %s513_s2 = inlined_call_operand.hbm [shape: f32[64,64], index: 2, kind: output, shape index: {}]  }
   0x1   :  { %9 = vsyncpa [#allocation3 + $0x1], 0  ;;  %s421_s9 = smov 0   ;;  %s423_s10 = smov 0  }
   0x2   :  { %s425_s11 = smov 0   ;;  %s427_s12 = smov 0  }
   0x3 LB: > { %s442_s13 = sadd.s32 4294967295, %s402_s12   ;;  %s276_s14 = sadd.s32 4294967294, %s402_s12   ;;  %s402_s12 = sphi %s427_s12, %s519_s12   ;;  %s398_s11 = sphi %s425_s11, %s518_s11   ;;  %s394_s10 = sphi %s423_s10, %s517_s10   ;;  %s390_s9 = sphi %s421_s9, %s516_s9  }
   0x4   : > { %s446_s15 = sadd.s32 1, %s402_s12   ;;  %s69_s16 = sadd.s32 1, %s398_s11 }
   0x5   : > { %s66_s17 = ssub.s32 %s402_s12, %s446_s15  ;;  %p79_p0 = scmp.ne.s32.totalorder %s398_s11, %s394_s10 }
   0x6   : > { %p67_p1 = scmp.eq.s32.totalorder %s66_s17, 0  ;;  %p80_p2 = scmp.eq.s32.totalorder %s442_s13, 1 }
   0x7   : > { %p85_p3 = scmp.ne.s32.totalorder %s394_s10, %s390_s9  ;;  %p86_p4 = scmp.eq.s32.totalorder %s276_s14, 1 }
   0x8   : > { %s457_s18 = scalar_select %p67_p1, %s398_s11, %s69_s16  }
   0x9   : > { %p459_p5 = por %p80_p2, %p79_p0  ;;  %p463_p6 = por %p86_p4, %p85_p3 }
   0xa   : > { %p279_p7 = scmp.ge.s32.totalorder %s402_s12, 1  ;;  %p116_p8 = scmp.lt.s32.totalorder %s402_s12, 3 }
   0xc   : > { %p117_p9 = pnand %p279_p7, %p116_p8 }
   0xd   : > { %s281_s25 = sshll.u32 (!%p117_p9), %s442_s13, 2  ;;  %s135_s30 = sand.u32 (!%p117_p9), 1, %s394_s10  }
   0xe   : > { %120 = sbr.rel (%p117_p9) target bundleno = 161 (0xa1), region = 28  ;;  %p139_p10 = scmp.lt.s32.totalorder (!%p117_p9), %s281_s25, 7 }
   0xf   : > { %s280_s3 = sshll.u32 (!%p117_p9), %s135_s30, 5  ;;  %s292_s4 = sshll.u32 (!%p117_p9), %s442_s13, 5 }
  0x10   : > { %s210_s7 = scalar_lea.hbm (!%p117_p9), %s513_s2, %s292_s4  ;;  %s137_s8 = scalar_lea.vmem (!%p117_p9), [#allocation2], %s280_s3 }
  0x11   : > { %s211_s14 = sshll.u32 (!%p117_p9), %s137_s8, 4  ;;  %s213_s16 = sshll.u32 (!%p117_p9), %s210_s7, 4  ;;  %s212_s14 = int_to_ptr.vmem [resolvable:$true] %s211_s14  ;;  %s214_s16 = int_to_ptr.hbm [resolvable:$true] %s213_s16 }
  0x12   : > { %s199_s13 = scalar_lea.sflag (!%p117_p9), [#allocation3], %s135_s30  ;;  %s354_s17 = sshra.s32 (!%p117_p9), %s214_s16, 4  ;;  %s355_s17 = int_to_ptr.hbm [resolvable:$true] %s354_s17 }
  0x13   : > { %v150_v0 = vld [vmem:[%s512_s1 + $0x8] sm:$0xff]  ;;  %v149_v1 = vld [vmem:[%s512_s1] sm:$0xff]  ;;  %s521_s25 = smov (!%p139_p10, %s281_s25), 7  ;;  %vm151_vm0 = vcmask 130048   ;;  %vm193_vm1 = vcmask 523264   ;;  %s356_s21 = scalar_lea.hbm %s355_s17, 32 }
  0x14   : > { %294 = vmatpush.msra.mxu2 %v150_v0  ;;  %295 = vmatpush.msra.mxu3 %v150_v0  ;;  %s282_s26 = sshll.u32 %s521_s25, 3  ;;  %p357_p11 = scmp.ne.s32.totalorder %s355_s17, %s356_s21 }
  0x15   : > { %178 = vmatpush.msra.mxu0 %v150_v0  ;;  %293 = vmatpush.msra.mxu1 %v150_v0  ;;  %s142_s29 = scalar_lea.vmem %s511_s0, %s282_s26  ;;  %s360_s24 = scalar_lea.hbm %s513_s2, 64 }
  0x16   : > { %297 = vmatpush.msra.mxu2 %v149_v1  ;;  %298 = vmatpush.msra.mxu3 %v149_v1  ;;  %v147_v2 = vld [vmem:[%s142_s29 + $0x10] sm:$0xff]  ;;  %v148_v3 = vld [vmem:[%s142_s29 + $0x18] sm:$0xff]  ;;  %v145_v4 = vld [vmem:[%s142_s29] sm:$0xff]  ;;  %p358_p12 = pnand %p357_p11, %p459_p5  ;;  %p361_p0 = scmp.lt.s32.totalorder %s355_s17, %s513_s2 }
  0x17   : > { %179 = vmatpush.msra.mxu0 %v149_v1  ;;  %296 = vmatpush.msra.mxu1 %v149_v1  ;;  %v146_v5 = vld [vmem:[%s142_s29 + $0x8] sm:$0xff]  ;;  %p362_p1 = scmp.lt.s32.totalorder %s360_s24, %s356_s21 }
  0x18   : > { %285 = vmatmul.msk.f32.vlgmr.msra.gmra.mxu2 %vm151_vm0, %v147_v2  ;;  %286 = vmatmul.msk.f32.vlgmr.msra.gmra.mxu3 %vm151_vm0, %v148_v3  ;;  %p359_p13 = pneg %p358_p12 }
  0x19   : > { %283 = vmatmul.msk.f32.vlgmr.msra.gmra.mxu0 %vm151_vm0, %v145_v4  ;;  %284 = vmatmul.msk.f32.vlgmr.msra.gmra.mxu1 %vm151_vm0, %v146_v5  ;;  %p363_p2 = por %p362_p1, %p361_p0 }
  0x1b   : > { %p364_p3 = pnand %p363_p2, %p359_p13 }
  0x96   : > { %v181_v6 = vpop.f32.mrf.mxu0  ;;  %v184_v7 = vpop.f32.mrf.mxu1 }
  0x97   : > { %194 = vst.msk [vmem:[%s137_s8] sm:$0xff] %vm193_vm1, %v181_v6 }
  0x98   : > { %195 = vst.msk [vmem:[%s137_s8 + $0x8] sm:$0xff] %vm193_vm1, %v184_v7 }
  0x9b   : > { %v187_v8 = vpop.f32.mrf.mxu2  ;;  %v190_v9 = vpop.f32.mrf.mxu3 }
  0x9c   : > { %196 = vst.msk [vmem:[%s137_s8 + $0x10] sm:$0xff] %vm193_vm1, %v187_v8 }
  0x9d   : > { %197 = vst.msk [vmem:[%s137_s8 + $0x18] sm:$0xff] %vm193_vm1, %v190_v9 }
  0x9e   : > { %367 = shalt.err (!%p364_p3)
}
  0x9f   : > { %s404_s27 = smov 128   ;;  %s405_s28 = smov 8  }
  0xa0   : > { %299 = dma.vmem_to_hbm [thread:$0]  (%p459_p5), %s212_s14, 512, %s214_s16, %s199_s13, %s404_s27, %s404_s27, %s405_s28  }
  0xa1 PF: > { %p305_p4 = scmp.ge.s32.totalorder %s402_s12, 2  ;;  %s228_s29 = sand.u32 1, %s390_s9  }
  0xa2   : > { %s229_s30 = scalar_lea.sflag [#allocation3], %s228_s29 }
  0xa3   : > { %p302_p7 = pnand %p305_p4, %p463_p6 }
  0xa5   : > { %p303_p8 = pneg %p302_p7 }
  0xa7   : > { %385 = dma.done.wait (%p303_p8), %s229_s30, 512  }
  0xa8   : > { %387 = vsyncadd (%p303_p8), %s229_s30, 4294966784  ;;  %p12_p9 = scmp.ge.s32.totalorder %s446_s15, 4   ;;  %s516_s9 = smov %s394_s10 }
  0xa9   : > { %s517_s10 = smov %s398_s11  ;;  %s518_s11 = smov %s457_s18 }
  0xaa   : > { %s519_s12 = smov %s446_s15  ;;  %14 = sbr.rel (!%p12_p9) target bundleno = 3 (0x3), region = 63 }
  0xaf   :  { %235 = vsyncpa [#allocation3], 1 }
  0xb0   :  { %237 = vsyncpa [#allocation3 + $0x1], 1 }

</bundles_post_ra>
